<compile_context>
chip_gen: v6e
topology: v6e:2x2x1
jax: 0.10.0
libtpu: 0.0.40
codegen_flags: <defaults>
</compile_context>

<pallas_src>
import functools

import jax
import jax.numpy as jnp
from jax.experimental import pallas as pl
from jax.experimental.pallas import tpu as pltpu

LANE = 128


def _round_up(x, m):
    return (x + m - 1) // m * m


def _largest_divisor_leq(n, cap):
    """Largest divisor of n that is <= cap (>= 1)."""
    cap = max(1, min(n, cap))
    for d in range(cap, 0, -1):
        if n % d == 0:
            return d
    return 1


def _largest_lane_divisor(hw, max_elems):
    """Largest multiple-of-LANE divisor of hw (hw % LANE == 0) <= max_elems."""
    n = hw // LANE
    best = 1
    k = 1
    while k <= n and k * LANE <= max_elems:
        if n % k == 0:
            best = k
        k += 1
    return best * LANE


def _vmem_budgets():
    """(scoped VMEM limit, per-block byte budget) derived from the chip."""
    try:
        cap = int(pltpu.get_tpu_info().vmem_capacity_bytes)
    except Exception:
        cap = 64 * 1024 * 1024  # conservative (v7x-sized) fallback
    # v5e/v6e (128 MiB physical) -> ~96 MiB scoped; v7x (64 MiB) -> ~48 MiB.
    vmem_limit = max(32 * 1024 * 1024, (cap * 3) // 4)
    # Streaming blocks are double-buffered for input AND output (4x block);
    # keep ~20% headroom for weights / scratch / semaphores.
    block_budget = vmem_limit // 5
    return vmem_limit, block_budget


# --------------------------------------------------------------------------
# Fused single-pass kernel: whole per-sample slab resident (read once, write
# once).  Excitation is batched over the TB samples of the block.
# --------------------------------------------------------------------------
def _se_fused_kernel(x_ref, w1t_ref, b1_ref, w2t_ref, b2_ref, o_ref, *, inv_hw):
    # x_ref: (TB, C, HW); w1t: (C, mid); b1: (1, mid); w2t: (mid, C); b2: (1, C)
    mean = jnp.sum(x_ref[...], axis=-1, dtype=jnp.float32) * inv_hw        # (TB, C)
    h = jnp.dot(mean, w1t_ref[...], preferred_element_type=jnp.float32) + b1_ref[...]
    h = jnp.maximum(h, 0.0)
    s = jnp.dot(h, w2t_ref[...], preferred_element_type=jnp.float32) + b2_ref[...]
    gate = jax.nn.sigmoid(s)                                               # (TB, C)
    o_ref[...] = (x_ref[...] * gate[:, :, None]).astype(o_ref.dtype)


# --------------------------------------------------------------------------
# Two-phase path, phase 1: spatial reduction + batched excitation.
# Grid = (batch tiles [parallel], spatial tiles [arbitrary / reduction]).
# --------------------------------------------------------------------------
def _se_gate_kernel(x_ref, w1t_ref, b1_ref, w2t_ref, b2_ref, gate_ref, acc_ref,
                    *, inv_hw):
    hw_step = pl.program_id(1)

    @pl.when(hw_step == 0)
    def _():
        acc_ref[...] = jnp.zeros_like(acc_ref)

    acc_ref[...] += jnp.sum(x_ref[...], axis=-1, dtype=jnp.float32)        # (TB, C)

    @pl.when(hw_step == pl.num_programs(1) - 1)
    def _():
        mean = acc_ref[...] * inv_hw
        h = jnp.dot(mean, w1t_ref[...], preferred_element_type=jnp.float32) + b1_ref[...]
        h = jnp.maximum(h, 0.0)
        s = jnp.dot(h, w2t_ref[...], preferred_element_type=jnp.float32) + b2_ref[...]
        gate_ref[...] = jax.nn.sigmoid(s)[:, :, None].astype(gate_ref.dtype)


# --------------------------------------------------------------------------
# Two-phase path, phase 2: pure streaming scale pass (both axes parallel).
# --------------------------------------------------------------------------
def _se_scale_kernel(x_ref, gate_ref, o_ref):
    # x_ref: (TB, C, T_HW); gate_ref: (TB, C, 1)
    o_ref[...] = (x_ref[...] * gate_ref[...]).astype(o_ref.dtype)


def se_block(x, w1, b1, w2, b2, *, block_budget_bytes=None):
    """x: [B, C, H, W]. Weights follow PyTorch Conv2d(1x1) shapes squeezed to
    2D: w1 [mid, C], b1 [mid], w2 [C, mid], b2 [C]."""
    B, C, H, W = x.shape
    mid = w1.shape[0]
    HW = H * W
    dtype = x.dtype
    bpe = jnp.dtype(dtype).itemsize

    vmem_limit, auto_budget = _vmem_budgets()
    block_budget = auto_budget if block_budget_bytes is None else block_budget_bytes

    # Tiny weights, pre-transposed so excitation is [TB,C]@[C,mid], [TB,mid]@[mid,C].
    w1t = w1.T                      # (C, mid)
    w2t = w2.T                      # (mid, C)
    b1r = b1.reshape(1, mid)
    b2r = b2.reshape(1, C)
    inv_hw = 1.0 / float(HW)

    x_flat = x.reshape(B, C, HW)
    slab_bytes = C * HW * bpe       # one sample's (unpadded) slab
    x_bytes = B * slab_bytes

    if slab_bytes <= block_budget:
        # ---------------- Fused single pass (read x once, write once) ------
        tb_budget = max(1, block_budget // slab_bytes)
        # Target >= min(B, 4) grid steps so DMA overlaps compute and both v7x
        # TensorCores get work.
        tb_steps_cap = max(1, B // min(B, 4))
        tb = _largest_divisor_leq(B, min(tb_budget, tb_steps_cap))
        n_b = B // tb

        cost = pl.CostEstimate(
            flops=2 * B * C * HW + 4 * B * C * mid,
            transcendentals=B * (C + mid),
            bytes_accessed=2 * x_bytes,
        )
        out_flat = pl.pallas_call(
            functools.partial(_se_fused_kernel, inv_hw=inv_hw),
            out_shape=jax.ShapeDtypeStruct((B, C, HW), dtype),
            grid_spec=pltpu.PrefetchScalarGridSpec(
                num_scalar_prefetch=0,
                grid=(n_b,),
                in_specs=[
                    pl.BlockSpec((tb, C, HW), lambda b: (b, 0, 0)),
                    pl.BlockSpec((C, mid), lambda b: (0, 0)),
                    pl.BlockSpec((1, mid), lambda b: (0, 0)),
                    pl.BlockSpec((mid, C), lambda b: (0, 0)),
                    pl.BlockSpec((1, C), lambda b: (0, 0)),
                ],
                out_specs=pl.BlockSpec((tb, C, HW), lambda b: (b, 0, 0)),
            ),
            compiler_params=pltpu.CompilerParams(
                dimension_semantics=("parallel",),
                vmem_limit_bytes=vmem_limit),
            cost_estimate=cost,
        )(x_flat, w1t, b1r, w2t, b2r)
        return out_flat.reshape(B, C, H, W)

    # ---------------- Two-phase: gate pass + streaming scale pass ----------
    if HW % LANE == 0 or HW < LANE:
        hw_work, pad = HW, 0        # fully unpadded (common case)
    else:
        # Rare corner: huge AND ragged spatial dim.  Keep zero padding so the
        # lane-tiled spatial reduction stays exact (correctness-safe choice).
        hw_work = _round_up(HW, LANE)
        pad = hw_work - HW

    x_work = x_flat if pad == 0 else jnp.pad(x_flat, ((0, 0), (0, 0), (0, pad)))

    if hw_work % LANE == 0:
        max_lane_elems = max(LANE, block_budget // (C * bpe))
        t_hw = _largest_lane_divisor(hw_work, max_lane_elems)
    else:
        t_hw = hw_work              # HW < 128: single full-dim spatial tile
    tb_budget = max(1, block_budget // (C * t_hw * bpe))
    tb_steps_cap = max(1, B // min(B, 4))
    tb = _largest_divisor_leq(B, min(tb_budget, tb_steps_cap))
    n_b = B // tb
    n_hw = hw_work // t_hw

    gate_cost = pl.CostEstimate(
        flops=B * C * HW + 4 * B * C * mid,
        transcendentals=B * (C + mid),
        bytes_accessed=x_bytes,
    )
    gate = pl.pallas_call(
        functools.partial(_se_gate_kernel, inv_hw=inv_hw),
        out_shape=jax.ShapeDtypeStruct((B, C, 1), jnp.float32),
        grid_spec=pltpu.PrefetchScalarGridSpec(
            num_scalar_prefetch=0,
            grid=(n_b, n_hw),
            in_specs=[
                pl.BlockSpec((tb, C, t_hw), lambda b, h: (b, 0, h)),
                pl.BlockSpec((C, mid), lambda b, h: (0, 0)),
                pl.BlockSpec((1, mid), lambda b, h: (0, 0)),
                pl.BlockSpec((mid, C), lambda b, h: (0, 0)),
                pl.BlockSpec((1, C), lambda b, h: (0, 0)),
            ],
            out_specs=pl.BlockSpec((tb, C, 1), lambda b, h: (b, 0, 0)),
            scratch_shapes=[pltpu.VMEM((tb, C), jnp.float32)],
        ),
        compiler_params=pltpu.CompilerParams(
            dimension_semantics=("parallel", "arbitrary"),
            vmem_limit_bytes=vmem_limit),
        cost_estimate=gate_cost,
    )(x_work, w1t, b1r, w2t, b2r)

    scale_cost = pl.CostEstimate(
        flops=B * C * HW,
        transcendentals=0,
        bytes_accessed=2 * x_bytes,
    )
    out_work = pl.pallas_call(
        _se_scale_kernel,
        out_shape=jax.ShapeDtypeStruct((B, C, hw_work), dtype),
        grid_spec=pltpu.PrefetchScalarGridSpec(
            num_scalar_prefetch=0,
            grid=(n_b, n_hw),
            in_specs=[
                pl.BlockSpec((tb, C, t_hw), lambda b, h: (b, 0, h)),
                pl.BlockSpec((tb, C, 1), lambda b, h: (b, 0, 0)),
            ],
            out_specs=pl.BlockSpec((tb, C, t_hw), lambda b, h: (b, 0, h)),
        ),
        compiler_params=pltpu.CompilerParams(
            dimension_semantics=("parallel", "parallel"),
            vmem_limit_bytes=vmem_limit),
        cost_estimate=scale_cost,
    )(x_work, gate)

    out_flat = out_work if pad == 0 else out_work[:, :, :HW]
    return out_flat.reshape(B, C, H, W)


def se_block_reference(x, w1, b1, w2, b2):
    # Pure-JAX reference mirroring the PyTorch forward exactly.
    mean = jnp.mean(x, axis=(2, 3), keepdims=True)                       # (B, C, 1, 1)
    h = jnp.einsum("mc,bcij->bmij", w1, mean) + b1[None, :, None, None]
    h = jnp.maximum(h, 0.0)
    s = jnp.einsum("cm,bmij->bcij", w2, h) + b2[None, :, None, None]
    gate = jax.nn.sigmoid(s)
    return x * gate


if __name__ == "__main__":
    # Small shapes consistent with the module: channels=16, reduction=8 -> mid=2.
    B, C, H, W = 2, 16, 8, 8
    reduction = 8
    mid = C // reduction

    key = jax.random.PRNGKey(0)
    kx, k1, k2, k3, k4 = jax.random.split(key, 5)

    x = jax.random.normal(kx, (B, C, H, W), dtype=jnp.float32)
    w1 = jax.random.normal(k1, (mid, C), dtype=jnp.float32) * (1.0 / jnp.sqrt(C))
    b1 = jax.random.normal(k2, (mid,), dtype=jnp.float32) * 0.1
    w2 = jax.random.normal(k3, (C, mid), dtype=jnp.float32) * (1.0 / jnp.sqrt(mid))
    b2 = jax.random.normal(k4, (C,), dtype=jnp.float32) * 0.1

    ref = se_block_reference(x, w1, b1, w2, b2)

    # Default (auto, per-generation) budget -> fused single-pass path.
    out = se_block(x, w1, b1, w2, b2)
    out = jax.block_until_ready(out)
    assert out.shape == (B, C, H, W)
    assert jnp.allclose(out, ref, atol=1e-5, rtol=1e-5)

    # Tiny forced budget -> exercises the two-phase (gate + streaming scale)
    # path used for very large feature maps.
    out2 = se_block(x, w1, b1, w2, b2, block_budget_bytes=2 * 1024)
    out2 = jax.block_until_ready(out2)
    assert jnp.allclose(out2, ref, atol=1e-5, rtol=1e-5)

    print("KERNEL_OK")
</pallas_src>

<mosaic_0001>
module attributes {stable_mosaic.version = 11 : i64} {
  func.func @_se_fused_kernel(%arg0: i32, %arg1: memref<1x16x64xf32, #tpu.memory_space<vmem>>, %arg2: memref<16x2xf32, #tpu.memory_space<vmem>>, %arg3: memref<1x2xf32, #tpu.memory_space<vmem>>, %arg4: memref<2x16xf32, #tpu.memory_space<vmem>>, %arg5: memref<1x16xf32, #tpu.memory_space<vmem>>, %arg6: memref<1x16x64xf32, #tpu.memory_space<vmem>>) attributes {dimension_semantics = [#tpu.dimension_semantics<parallel>], iteration_bounds = array<i64: 2>, scalar_prefetch = 0 : i64, scratch_operands = 0 : i64, tpu.core_type = #tpu.core_type<tc>, window_params = [{transform_indices = @transform_0, window_bounds = array<i64: 1, 16, 64>}, {pipeline_mode = #tpu.pipeline_mode<synchronous>, transform_indices = @transform_1, window_bounds = array<i64: 16, 2>}, {pipeline_mode = #tpu.pipeline_mode<synchronous>, transform_indices = @transform_2, window_bounds = array<i64: 1, 2>}, {pipeline_mode = #tpu.pipeline_mode<synchronous>, transform_indices = @transform_3, window_bounds = array<i64: 2, 16>}, {pipeline_mode = #tpu.pipeline_mode<synchronous>, transform_indices = @transform_4, window_bounds = array<i64: 1, 16>}, {transform_indices = @transform_5, window_bounds = array<i64: 1, 16, 64>}]} {
    %c0 = arith.constant 0 : index
    %c0_0 = arith.constant 0 : index
    %c0_1 = arith.constant 0 : index
    %0 = vector.load %arg1[%c0, %c0_0, %c0_1] : memref<1x16x64xf32, #tpu.memory_space<vmem>>, vector<1x16x64xf32>
    %cst = arith.constant dense<0.000000e+00> : vector<1x16xf32>
    %1 = vector.multi_reduction <add>, %0, %cst [2] : vector<1x16x64xf32> to vector<1x16xf32>
    %cst_2 = arith.constant 1.562500e-02 : f32
    %2 = vector.broadcast %cst_2 : f32 to vector<1x16xf32>
    %3 = arith.mulf %1, %2 : vector<1x16xf32>
    %c0_3 = arith.constant 0 : index
    %c0_4 = arith.constant 0 : index
    %4 = vector.load %arg2[%c0_3, %c0_4] : memref<16x2xf32, #tpu.memory_space<vmem>>, vector<16x2xf32>
    %cst_5 = arith.constant dense<0.000000e+00> : vector<1x2xf32>
    %5 = tpu.matmul %3, %4, %cst_5 {dimension_numbers = #tpu.dot_dimension_numbers<[1], [0], [0], [1], [0, 0, 1, 1], [], []>} : vector<1x16xf32>, vector<16x2xf32>, vector<1x2xf32> -> vector<1x2xf32>
    %c0_6 = arith.constant 0 : index
    %c0_7 = arith.constant 0 : index
    %6 = vector.load %arg3[%c0_6, %c0_7] : memref<1x2xf32, #tpu.memory_space<vmem>>, vector<1x2xf32>
    %7 = arith.addf %5, %6 : vector<1x2xf32>
    %cst_8 = arith.constant 0.000000e+00 : f32
    %8 = vector.broadcast %cst_8 : f32 to vector<1x2xf32>
    %9 = arith.maximumf %7, %8 : vector<1x2xf32>
    %c0_9 = arith.constant 0 : index
    %c0_10 = arith.constant 0 : index
    %10 = vector.load %arg4[%c0_9, %c0_10] : memref<2x16xf32, #tpu.memory_space<vmem>>, vector<2x16xf32>
    %cst_11 = arith.constant dense<0.000000e+00> : vector<1x16xf32>
    %11 = tpu.matmul %9, %10, %cst_11 {dimension_numbers = #tpu.dot_dimension_numbers<[1], [0], [0], [1], [0, 0, 1, 1], [], []>} : vector<1x2xf32>, vector<2x16xf32>, vector<1x16xf32> -> vector<1x16xf32>
    %c0_12 = arith.constant 0 : index
    %c0_13 = arith.constant 0 : index
    %12 = vector.load %arg5[%c0_12, %c0_13] : memref<1x16xf32, #tpu.memory_space<vmem>>, vector<1x16xf32>
    %13 = arith.addf %11, %12 : vector<1x16xf32>
    %14 = arith.negf %13 : vector<1x16xf32>
    %15 = math.exp %14 : vector<1x16xf32>
    %cst_14 = arith.constant 1.000000e+00 : f32
    %16 = vector.broadcast %cst_14 : f32 to vector<1x16xf32>
    %17 = arith.addf %16, %15 : vector<1x16xf32>
    %18 = arith.divf %16, %17 : vector<1x16xf32>
    %c0_15 = arith.constant 0 : index
    %c0_16 = arith.constant 0 : index
    %c0_17 = arith.constant 0 : index
    %19 = vector.load %arg1[%c0_15, %c0_16, %c0_17] : memref<1x16x64xf32, #tpu.memory_space<vmem>>, vector<1x16x64xf32>
    %20 = vector.shape_cast %18 : vector<1x16xf32> to vector<1x16x1xf32>
    %21 = vector.broadcast %20 : vector<1x16x1xf32> to vector<1x16x64xf32>
    %22 = arith.mulf %19, %21 : vector<1x16x64xf32>
    %c0_18 = arith.constant 0 : index
    %c0_19 = arith.constant 0 : index
    %c0_20 = arith.constant 0 : index
    %23 = vector.load %arg6[%c0_18, %c0_19, %c0_20] : memref<1x16x64xf32, #tpu.memory_space<vmem>>, vector<1x16x64xf32>
    tpu.vector_store %arg6[%c0_18, %c0_19, %c0_20], %22 {strides = array<i32>} : memref<1x16x64xf32, #tpu.memory_space<vmem>>, vector<1x16x64xf32>,
    return
  }
  func.func @transform_0(%arg0: i32) -> (i32, i32, i32) {
    %c0_i32 = arith.constant 0 : i32
    %c0_i32_0 = arith.constant 0 : i32
    %c0_i32_1 = arith.constant 0 : i32
    return %arg0, %c0_i32, %c0_i32_0 : i32, i32, i32
  }
  func.func @transform_1(%arg0: i32) -> (i32, i32) {
    %c0_i32 = arith.constant 0 : i32
    %c0_i32_0 = arith.constant 0 : i32
    %c0_i32_1 = arith.constant 0 : i32
    return %c0_i32, %c0_i32_0 : i32, i32
  }
  func.func @transform_2(%arg0: i32) -> (i32, i32) {
    %c0_i32 = arith.constant 0 : i32
    %c0_i32_0 = arith.constant 0 : i32
    %c0_i32_1 = arith.constant 0 : i32
    return %c0_i32, %c0_i32_0 : i32, i32
  }
  func.func @transform_3(%arg0: i32) -> (i32, i32) {
    %c0_i32 = arith.constant 0 : i32
    %c0_i32_0 = arith.constant 0 : i32
    %c0_i32_1 = arith.constant 0 : i32
    return %c0_i32, %c0_i32_0 : i32, i32
  }
  func.func @transform_4(%arg0: i32) -> (i32, i32) {
    %c0_i32 = arith.constant 0 : i32
    %c0_i32_0 = arith.constant 0 : i32
    %c0_i32_1 = arith.constant 0 : i32
    return %c0_i32, %c0_i32_0 : i32, i32
  }
  func.func @transform_5(%arg0: i32) -> (i32, i32, i32) {
    %c0_i32 = arith.constant 0 : i32
    %c0_i32_0 = arith.constant 0 : i32
    %c0_i32_1 = arith.constant 0 : i32
    return %arg0, %c0_i32, %c0_i32_0 : i32, i32, i32
  }
}

</mosaic_0001>

<bundles_post_ra>
// kernel: tpu_custom_call.1
= control target key start
LH: loop header
LB: loop body
LE: loop exit
PB: predicated region body
PF: predicated region fallthrough
CT: control target
= control target key end

     0   :  { %10 = vsyncpa [#allocation3], 0  ;;  %s940_s0 = inlined_call_operand.hbm [shape: f32[2,16,64], index: 0, kind: input, shape index: {}]   ;;  %s941_s1 = inlined_call_operand.vmem [shape: f32[16,2], index: 1, kind: input, shape index: {}]   ;;  %s942_s2 = inlined_call_operand.vmem [shape: f32[1,2], index: 2, kind: input, shape index: {}]   ;;  %s943_s3 = inlined_call_operand.vmem [shape: f32[2,16], index: 3, kind: input, shape index: {}]   ;;  %s944_s4 = inlined_call_operand.vmem [shape: f32[1,16], index: 4, kind: input, shape index: {}]   ;;  %s945_s5 = inlined_call_operand.hbm [shape: f32[2,16,64], index: 5, kind: output, shape index: {}]  }
   0x1   :  { %12 = vsyncpa [#allocation3 + $0x1], 0 }
   0x2   :  { %13 = vsyncpa [#allocation4], 0 }
   0x3   :  { %15 = vsyncpa [#allocation4 + $0x1], 0  ;;  %s759_s18 = smov 0   ;;  %s761_s19 = smov 0  }
   0x4   :  { %s763_s20 = smov 0   ;;  %s765_s21 = smov 0  }
   0x5 LB: > { %s780_s22 = sadd.s32 4294967295, %s719_s21   ;;  %s534_s23 = sadd.s32 4294967294, %s719_s21   ;;  %s719_s21 = sphi %s765_s21, %s960_s21   ;;  %s715_s20 = sphi %s763_s20, %s959_s20   ;;  %s711_s19 = sphi %s761_s19, %s958_s19   ;;  %s707_s18 = sphi %s759_s18, %s957_s18  }
   0x6   : > { %s784_s24 = sadd.s32 1, %s719_s21   ;;  %s28_s25 = sadd.s32 1, %s715_s20 }
   0x7   : > { %s25_s26 = ssub.s32 %s719_s21, %s784_s24  ;;  %p35_p0 = scmp.ne.s32.totalorder %s715_s20, %s711_s19 }
   0x8   : > { %p26_p1 = scmp.eq.s32.totalorder %s25_s26, 0  ;;  %p36_p2 = scmp.eq.s32.totalorder %s719_s21, 0 }
   0x9   : > { %p41_p3 = scmp.ne.s32.totalorder %s711_s19, %s707_s18  ;;  %p42_p4 = scmp.eq.s32.totalorder %s780_s22, 0 }
   0xa   : > { %s796_s27 = scalar_select %p26_p1, %s715_s20, %s28_s25  }
   0xb   : > { %p798_p5 = por %p36_p2, %p35_p0  ;;  %p802_p6 = por %p42_p4, %p41_p3 }
   0xc   : > { %p149_p7 = scmp.eq.s32.totalorder %s780_s22, 1  ;;  %p155_p8 = scmp.eq.s32.totalorder %s534_s23, 1 }
   0xd   : > { %s949_s29 = scalar_select %p802_p6, 1, 0 }
   0xe   : > { %p583_p10 = scmp.lt.s32.totalorder %s719_s21, 2  ;;  %p809_p11 = por %p149_p7, %p35_p0 }
   0xf   : > { %p813_p12 = por %p155_p8, %p41_p3  ;;  %s187_s7 = sand.u32 1, %s715_s20  }
  0x10   : > { %s950_s30 = scalar_select %p809_p11, 1, 0 }
  0x11   : > { %s951_s6 = scalar_select %p813_p12, 1, 0 }
  0x12   : > { %s552_s8 = sshll.u32 %s719_s21, 8  ;;  %s537_s9 = sshll.u32 %s187_s7, 4 }
  0x13   : > { %s822_s12 = scalar_lea.hbm %s940_s0, %s552_s8  ;;  %s191_s13 = scalar_lea.vmem [#allocation2], %s537_s9 }
  0x14   : > { %s198_s14 = sshll.u32 %s191_s13, 4  ;;  %p826_p13 = pnand %p583_p10, %p798_p5  ;;  %s830_s14 = int_to_ptr.vmem [resolvable:$true] %s198_s14 }
  0x15   : > { %s832_s16 = scalar_lea.sflag [#allocation3], %s187_s7  ;;  %s627_s17 = scalar_lea.hbm %s822_s12, 256 }
  0x16   : > { %p628_p0 = scmp.ne.s32.totalorder %s822_s12, %s627_s17  ;;  %p629_p1 = pneg %p826_p13 }
  0x17   : > { %s632_s26 = scalar_lea.hbm %s940_s0, 512  ;;  %p633_p4 = scmp.lt.s32.totalorder %s822_s12, %s940_s0 }
  0x18   : > { %p630_p2 = pnand %p629_p1, %p628_p0  ;;  %p634_p5 = scmp.lt.s32.totalorder %s632_s26, %s627_s17 }
  0x1a   : > { %p631_p3 = pneg %p630_p2  ;;  %p635_p7 = por %p634_p5, %p633_p4 }
  0x1c   : > { %p636_p8 = pnand %p635_p7, %p631_p3 }
  0x1e   : > { %639 = shalt.err (!%p636_p8)
}
  0x1f   : > { %s640_s7 = scalar_lea.vmem %s830_s14, 256  ;;  %s721_s9 = smov [#allocation2]  }
  0x20   : > { %p641_p10 = scmp.ne.s32.totalorder %s830_s14, %s640_s7  ;;  %s645_s10 = sshll.u32 %s721_s9, 4  ;;  %s646_s10 = int_to_ptr.vmem [resolvable:$false] %s645_s10 }
  0x21   : > { %s647_s11 = scalar_lea.vmem %s646_s10, 512  ;;  %p648_p2 = scmp.lt.s32.totalorder %s830_s14, %s646_s10 }
  0x22   : > { %p643_p9 = pnand %p641_p10, %p629_p1  ;;  %p649_p12 = scmp.lt.s32.totalorder %s647_s11, %s640_s7 }
  0x24   : > { %p644_p0 = pneg %p643_p9  ;;  %p650_p11 = por %p649_p12, %p648_p2 }
  0x26   : > { %p651_p6 = pnand %p650_p11, %p644_p0 }
  0x28   : > { %654 = shalt.err (!%p651_p6)
}
  0x29   : > { %s722_s13 = smov 128   ;;  %s723_s17 = smov 8  }
  0x2a   : > { %578 = dma.hbm_to_vmem [thread:$0]  (!%p826_p13), %s822_s12, 256, %s830_s14, %s832_s16, %s722_s13, %s722_s13, %s723_s17  }
  0x2b   : > { %p540_p9 = scmp.ge.s32.totalorder %s719_s21, 1  ;;  %p206_p1 = scmp.lt.s32.totalorder %s719_s21, 3 }
  0x2d   : > { %p207_p3 = pnand %p540_p9, %p206_p1 }
  0x2e   : > { %s856_s23 = sand.u32 (!%p207_p3), 1, %s711_s19   ;;  %p953_p6 = scmp.ne.s32.totalorder (!%p207_p3), %s949_s29, 0 }
  0x2f   : > { %210 = sbr.rel (%p207_p3) target bundleno = 763 (0x2fb), region = 40  ;;  %s541_s25 = sshll.u32 (!%p207_p3), %s856_s23, 4 }
  0x30   : > { %s213_s26 = scalar_lea.sflag (!%p207_p3), [#allocation3], %s856_s23  ;;  %s216_s28 = scalar_lea.vmem (!%p207_p3), [#allocation2], %s541_s25 }
  0x34   : > { %698 = dma.done.wait (%p953_p6), %s213_s26, 256  }
  0x35   : > { %700 = vsyncadd (%p953_p6), %s213_s26, 4294967040  ;;  %vm245_vm0 = vcmask 523264   ;;  %v243_v0 = vld [vmem:[%s216_s28] sm:$0xff]  ;;  %v866_v1 = vld [vmem:[%s216_s28 + $0x8] sm:$0xff]  ;;  %v724_v4 = vmov 0.0   ;;  %vm725_vm1 = vmmov 0   ;;  %v259_v7 = vlaneseq }
  0x36   : > { %v246_v2 = vsel %vm245_vm0, %v243_v0, 0.0  ;;  %v249_v3 = vsel %vm245_vm0, %v866_v1, 0.0  ;;  %559 = vmatprep.subr.mxu0 %v724_v4  ;;  %v255_v5 = vld [vmem:[%s941_s1 + $0x8] sm:$0xff]  ;;  %566 = vmatprep.subr.mxu1 %v724_v4  ;;  %v254_v6 = vld [vmem:[%s941_s1] sm:$0xff]  ;;  %vm270_vm2 = vcmask 130112   ;;  %vm272_vm3 = vcmask 130048  }
  0x37   : > { %247 = vadd.xlane.f32.xlu0 %v246_v2  ;;  %560 = vmatpush3.msra.mxu0 %v255_v5  ;;  %v260_v8 = vand.u32 127, %v259_v7  ;;  %v262_v9 = vshrl.u32 %v259_v7, 7  ;;  %v346_v20 = vld [vmem:[%s943_s3] sm:$0x3]  ;;  %vm352_vm4 = vcmask 1041408   ;;  %vm348_vm5 = vcmask 15360  }
  0x38   : > { %561 = vmatprep.subr.mxu0 %v724_v4  ;;  %563 = vmatprep.mubr.msk.f32.mxu0 %vm725_vm1, %v724_v4  ;;  %v256_v21 = vld [vmem:[%s942_s2] sm:$0x1]  ;;  %s242_s13 = scalar_lea.vmem [#allocation5], %s541_s25  ;;  %s553_s26 = sshll.u32 %s780_s22, 8 }
  0x39   : > { %562 = vmatpush3.msra.mxu0 %v254_v6  ;;  %568 = vmatprep.mubr.msk.f32.mxu1 %vm725_vm1, %v724_v4  ;;  %v265_v10 = vadd.s32 4294967288, %v260_v8  ;;  %v263_v12 = vsub.s32 %v260_v8, %v262_v9  ;;  %v347_v26 = vld [vmem:[%s944_s4] sm:$0x1]  ;;  %v434_v33 = vsub.s32 0, %v262_v9  ;;  %s461_s17 = sshll.u32 %s242_s13, 4  ;;  %s895_s14 = scalar_lea.hbm %s945_s5, %s553_s26  ;;  %s889_s17 = int_to_ptr.vmem [resolvable:$true] %s461_s17 }
  0x3a   : > { %567 = vmatpush3.msk.msra.mxu1 %vm352_vm4, %v346_v20  ;;  %s448_s25 = scalar_lea.sflag [#allocation4], %s856_s23  ;;  %s655_s29 = scalar_lea.vmem %s889_s17, 256 }
  0x3b   : > { %250 = vadd.xlane.f32.xlu0 %v249_v3  ;;  %v268_v14 = vsub.s32 %v265_v10, %v262_v9  ;;  %p656_p11 = scmp.ne.s32.totalorder %s889_s17, %s655_s29  ;;  %p954_p12 = scmp.ne.s32.totalorder %s950_s30, 0 }
  0x3c   : > { %s726_s22 = smov [#allocation5]  }
  0x3d   : > { %p657_p13 = pnand %p656_p11, %p954_p12  ;;  %s659_s15 = sshll.u32 %s726_s22, 4  ;;  %s660_s15 = int_to_ptr.vmem [resolvable:$false] %s659_s15 }
  0x3e   : > { %s661_s16 = scalar_lea.vmem %s660_s15, 512  ;;  %p662_p5 = scmp.lt.s32.totalorder %s889_s17, %s660_s15 }
  0x3f   : > { %p658_p4 = pneg %p657_p13  ;;  %p663_p7 = scmp.lt.s32.totalorder %s661_s16, %s655_s29 }
  0x41   : > { %p664_p8 = por %p663_p7, %p662_p5 }
  0x43   : > { %p665_p10 = pnand %p664_p8, %p658_p4 }
  0xc0   : > { %v248_v11 = vpop.xlane.xlu0 %247 }
  0xc1   : > { %v252_v13 = vmul.f32 0.015625, %v248_v11 }
  0xc3   : > { %v264_v17 = vrot.slane %v252_v13, %v263_v12 }
  0xc4   : > { %v251_v15 = vpop.xlane.xlu0 %250 }
  0xc5   : > { %v253_v16 = vmul.f32 0.015625, %v251_v15 }
  0xc7   : > { %v269_v18 = vrot.slane %v253_v16, %v268_v14 }
  0xc9   : > { %v271_v19 = vsel %vm270_vm2, %v269_v18, %v264_v17 }
  0xca   : > { %564 = vmatmul.mubr.msk.f32.vlgmr.msra.gmra.mxu0 %vm272_vm3, %v271_v19 }
 0x18a   : > { %v341_v22 = vpop.f32.mrf.mxu0 }
 0x18b   : > { %v342_v23 = vadd.f32 %v341_v22, %v256_v21 }
 0x18c   : > { %v565_v24 = vpop.f32.mrf.mxu0 }
 0x18d   : > { %v345_v25 = vmax.f32 %v342_v23, 0.0 }
 0x18f   : > { %569 = vmatmul.mubr.msk.f32.vlgmr.msra.gmra.mxu1 %vm348_vm5, %v345_v25 }
 0x24f   : > { %v422_v27 = vpop.f32.mrf.mxu1 }
 0x250   : > { %v423_v28 = vadd.f32 %v422_v27, %v347_v26 }
 0x251   : > { %v570_v29 = vpop.f32.mrf.mxu1 }
 0x252   : > { %v546_v30 = vmul.f32 -1.442695, %v423_v28 }
 0x254   : > { %623 = vpow2.f32 %v546_v30 }
 0x261   : > { %v624_v31 = vpop.eup %623 }
 0x262   : > { %v429_v32 = vadd.f32 1.0, %v624_v31 }
 0x264   : > { %625 = vrcp.f32 %v429_v32 }
 0x271   : > { %v626_v34 = vpop.eup %625 }
 0x272   : > { %v435_v35 = vrot.slane %v626_v34, %v434_v33 }
 0x274   : > { %437 = vbcast.lane.b32.xlu1 %v435_v35, 256 }
 0x278   : > { %441 = vbcast.lane.b32.xlu1 %v435_v35, 264 }
 0x2e6   : > { %v438_v36 = vpop.permute.xlu1 %437 }
 0x2e7   : > { %v443_v37 = vmul.f32 %v438_v36, %v243_v0 }
 0x2e9   : > { %445 = vst.msk [vmem:[%s242_s13] sm:$0xff] %vm245_vm0, %v443_v37 }
 0x2ea   : > { %v442_v38 = vpop.permute.xlu1 %441 }
 0x2eb   : > { %v444_v39 = vmul.f32 %v442_v38, %v866_v1 }
 0x2ed   : > { %446 = vst.msk [vmem:[%s242_s13 + $0x8] sm:$0xff] %vm245_vm0, %v444_v39 }
 0x2ee   : > { %668 = shalt.err (!%p665_p10)
}
 0x2ef   : > { %s669_s8 = scalar_lea.hbm %s895_s14, 256  ;;  %s673_s10 = scalar_lea.hbm %s945_s5, 512 }
 0x2f0   : > { %p670_p0 = scmp.ne.s32.totalorder %s895_s14, %s669_s8  ;;  %p674_p1 = scmp.lt.s32.totalorder %s895_s14, %s945_s5 }
 0x2f1   : > { %p675_p3 = scmp.lt.s32.totalorder %s673_s10, %s669_s8 }
 0x2f2   : > { %p671_p2 = pnand %p670_p0, %p954_p12 }
 0x2f3   : > { %p676_p6 = por %p675_p3, %p674_p1 }
 0x2f4   : > { %p672_p9 = pneg %p671_p2 }
 0x2f6   : > { %p677_p11 = pnand %p676_p6, %p672_p9 }
 0x2f8   : > { %680 = shalt.err (!%p677_p11)
}
 0x2f9   : > { %s727_s26 = smov 128   ;;  %s728_s28 = smov 8  }
 0x2fa   : > { %573 = dma.vmem_to_hbm [thread:$0]  (%p954_p12), %s889_s17, 256, %s895_s14, %s448_s25, %s727_s26, %s727_s26, %s728_s28  }
 0x2fb PF: > { %s476_s12 = sand.u32 1, %s707_s18   ;;  %p955_p13 = scmp.ne.s32.totalorder %s951_s6, 0 }
 0x2fc   : > { %p956_p4 = scmp.ge.s32.totalorder %s719_s21, 2  ;;  %s477_s29 = scalar_lea.sflag [#allocation4], %s476_s12 }
 0x2fe   : > { %p580_p5 = pnand %p956_p4, %p955_p13 }
 0x300   : > { %p581_p7 = pneg %p580_p5 }
 0x302   : > { %702 = dma.done.wait (%p581_p7), %s477_s29, 256  }
 0x303   : > { %704 = vsyncadd (%p581_p7), %s477_s29, 4294967040  ;;  %p18_p8 = scmp.ge.s32.totalorder %s784_s24, 4   ;;  %s957_s18 = smov %s711_s19 }
 0x304   : > { %s958_s19 = smov %s715_s20  ;;  %s959_s20 = smov %s796_s27 }
 0x305   : > { %s960_s21 = smov %s784_s24  ;;  %20 = sbr.rel (!%p18_p8) target bundleno = 5 (0x5), region = 85 }
 0x30a   :  { %482 = vsyncpa [#allocation3], 1 }
 0x30b   :  { %484 = vsyncpa [#allocation3 + $0x1], 1 }
 0x30c   :  { %485 = vsyncpa [#allocation4], 1 }
 0x30d   :  { %487 = vsyncpa [#allocation4 + $0x1], 1 }

</bundles_post_ra>
